<compile_context>
chip_gen: v7x
topology: tpu7x:2x2x1
jax: 0.10.0
libtpu: 0.0.40
codegen_flags: <defaults>
</compile_context>

<pallas_src>
import functools

import jax
import jax.numpy as jnp
from jax.experimental import pallas as pl
from jax.experimental.pallas import tpu as pltpu


def _rup8(c):
    return ((c + 7) // 8) * 8      # sublane multiple for f32


def _rup128(c):
    return ((c + 127) // 128) * 128  # lane multiple


# ---------------------------------------------------------------------------
# Pallas kernels
# ---------------------------------------------------------------------------

def _im2col_store(col_ref, x, K, dil):
    """Fill col_ref[(k*C):(k+1)*C, t] = x[:, t - (K-1-k)*dil] (zero where OOB).

    Realizes the causal left-pad + chomp of the PyTorch block without ever
    materializing a padded activation in HBM. col_ref rows are sublane-aligned
    because C is padded to a multiple of 8.
    """
    C, T = x.shape
    for k in range(K):                       # K is tiny and static
        shift = (K - 1 - k) * dil
        lo, hi = k * C, (k + 1) * C
        if shift == 0:
            col_ref[lo:hi, :] = x
        elif shift >= T:
            col_ref[lo:hi, :] = jnp.zeros((C, T), x.dtype)
        else:
            col_ref[lo:hi, :shift] = jnp.zeros((C, shift), x.dtype)
            col_ref[lo:hi, shift:] = x[:, :T - shift]


def _block_body(x, w1_ref, b1_ref, w2_ref, b2_ref, wd_ref, bd_ref,
                c1_ref, c2_ref, K, dil, has_down):
    """Shared TemporalBlock math for one batch row. Returns (Cout_p, T) f32."""
    # conv1 -> chomp -> ReLU  (single wide im2col matmul on the MXU)
    _im2col_store(c1_ref, x, K, dil)
    h1 = jnp.dot(w1_ref[...], c1_ref[...], preferred_element_type=jnp.float32)
    h1 = jnp.maximum(h1 + b1_ref[...], 0.0)

    # conv2 -> chomp -> ReLU
    _im2col_store(c2_ref, h1.astype(x.dtype), K, dil)
    h2 = jnp.dot(w2_ref[...], c2_ref[...], preferred_element_type=jnp.float32)
    h2 = jnp.maximum(h2 + b2_ref[...], 0.0)

    # residual (1x1 conv if channel mismatch) + final ReLU
    if has_down:
        res = jnp.dot(wd_ref[...], x, preferred_element_type=jnp.float32) + bd_ref[...]
    else:
        res = x.astype(jnp.float32)
    return jnp.maximum(h2 + res, 0.0)


def _block_kernel(x_ref, w1_ref, b1_ref, w2_ref, b2_ref, *rest, K, dil, has_down):
    """One fused TemporalBlock for one batch element (intermediate layers).

    x_ref:  (1, Cin_p, T)
    w1_ref: (Cout_p, K*Cin_p)   b1_ref: (Cout_p, 1)
    w2_ref: (Cout_p, K*Cout_p)  b2_ref: (Cout_p, 1)
    [wd_ref: (Cout_p, Cin_p)    bd_ref: (Cout_p, 1)]   (only if has_down)
    o_ref:  (1, Cout_p, T)
    c1_ref / c2_ref: im2col scratch
    """
    if has_down:
        wd_ref, bd_ref, o_ref, c1_ref, c2_ref = rest
    else:
        wd_ref = bd_ref = None
        o_ref, c1_ref, c2_ref = rest
    y = _block_body(x_ref[0], w1_ref, b1_ref, w2_ref, b2_ref, wd_ref, bd_ref,
                    c1_ref, c2_ref, K, dil, has_down)
    o_ref[0] = y.astype(o_ref.dtype)


def _block_head_kernel(x_ref, w1_ref, b1_ref, w2_ref, b2_ref, *rest,
                       K, dil, has_down):
    """Last TemporalBlock + linear head fused, for one batch element.

    Extra inputs: wl_ref (Cout_p, O_p), bl_ref (1, O_p).
    Output: o_ref (1, 1, O_p)  (lane-dense head row).
    """
    if has_down:
        wd_ref, bd_ref, wl_ref, bl_ref, o_ref, c1_ref, c2_ref = rest
    else:
        wd_ref = bd_ref = None
        wl_ref, bl_ref, o_ref, c1_ref, c2_ref = rest

    y = _block_body(x_ref[0], w1_ref, b1_ref, w2_ref, b2_ref, wd_ref, bd_ref,
                    c1_ref, c2_ref, K, dil, has_down)      # (Cout_p, T) f32

    # Last-timestep column via masked lane-reduce (robust keepdims pattern).
    T = y.shape[1]
    t_iota = jax.lax.broadcasted_iota(jnp.int32, y.shape, 1)
    last = jnp.sum(jnp.where(t_iota == T - 1, y, 0.0),
                   axis=1, keepdims=True)                   # (Cout_p, 1)

    # Head: out[o] = sum_c W[c, o] * last[c] + b[o]
    # (VPU broadcast-multiply + sublane reduce; output row is lane-dense.)
    out = jnp.sum(wl_ref[...] * last, axis=0, keepdims=True) + bl_ref[...]
    o_ref[0] = out.astype(o_ref.dtype)


# ---------------------------------------------------------------------------
# Wrappers
# ---------------------------------------------------------------------------

def temporal_block(x, p, dil, K):
    """x: (B, Cin_p, T) -> (B, Cout_p, T). One pallas_call for the whole block."""
    B, cin_p, T = x.shape
    cout_p = p["w1"].shape[0]
    has_down = "wd" in p

    in_specs = [
        pl.BlockSpec((1, cin_p, T), lambda i: (i, 0, 0)),
        pl.BlockSpec((cout_p, K * cin_p), lambda i: (0, 0)),
        pl.BlockSpec((cout_p, 1), lambda i: (0, 0)),
        pl.BlockSpec((cout_p, K * cout_p), lambda i: (0, 0)),
        pl.BlockSpec((cout_p, 1), lambda i: (0, 0)),
    ]
    args = [x, p["w1"], p["b1"], p["w2"], p["b2"]]
    if has_down:
        in_specs += [pl.BlockSpec((cout_p, cin_p), lambda i: (0, 0)),
                     pl.BlockSpec((cout_p, 1), lambda i: (0, 0))]
        args += [p["wd"], p["bd"]]

    kern = functools.partial(_block_kernel, K=K, dil=dil, has_down=has_down)
    return pl.pallas_call(
        kern,
        out_shape=jax.ShapeDtypeStruct((B, cout_p, T), x.dtype),
        grid=(B,),
        in_specs=in_specs,
        out_specs=pl.BlockSpec((1, cout_p, T), lambda i: (i, 0, 0)),
        scratch_shapes=[pltpu.VMEM((K * cin_p, T), x.dtype),
                        pltpu.VMEM((K * cout_p, T), x.dtype)],
        compiler_params=pltpu.CompilerParams(
            dimension_semantics=("parallel",)),       # batch rows are independent
    )(*args)


def temporal_block_with_head(x, p, lin_p, dil, K):
    """Last block + linear head fused: (B, Cin_p, T) -> (B, O_p)."""
    B, cin_p, T = x.shape
    cout_p = p["w1"].shape[0]
    o_p = lin_p["w"].shape[1]
    has_down = "wd" in p

    in_specs = [
        pl.BlockSpec((1, cin_p, T), lambda i: (i, 0, 0)),
        pl.BlockSpec((cout_p, K * cin_p), lambda i: (0, 0)),
        pl.BlockSpec((cout_p, 1), lambda i: (0, 0)),
        pl.BlockSpec((cout_p, K * cout_p), lambda i: (0, 0)),
        pl.BlockSpec((cout_p, 1), lambda i: (0, 0)),
    ]
    args = [x, p["w1"], p["b1"], p["w2"], p["b2"]]
    if has_down:
        in_specs += [pl.BlockSpec((cout_p, cin_p), lambda i: (0, 0)),
                     pl.BlockSpec((cout_p, 1), lambda i: (0, 0))]
        args += [p["wd"], p["bd"]]
    in_specs += [pl.BlockSpec((cout_p, o_p), lambda i: (0, 0)),
                 pl.BlockSpec((1, o_p), lambda i: (0, 0))]
    args += [lin_p["w"], lin_p["b"]]

    kern = functools.partial(_block_head_kernel, K=K, dil=dil, has_down=has_down)
    out = pl.pallas_call(
        kern,
        out_shape=jax.ShapeDtypeStruct((B, 1, o_p), x.dtype),
        grid=(B,),
        in_specs=in_specs,
        out_specs=pl.BlockSpec((1, 1, o_p), lambda i: (i, 0, 0)),
        scratch_shapes=[pltpu.VMEM((K * cin_p, T), x.dtype),
                        pltpu.VMEM((K * cout_p, T), x.dtype)],
        compiler_params=pltpu.CompilerParams(
            dimension_semantics=("parallel",)),
    )(*args)
    return out.reshape(B, o_p)


# ---------------------------------------------------------------------------
# Parameters: PyTorch-layout init + one-time prepack into kernel layout
# ---------------------------------------------------------------------------

def init_params(key, input_size, output_size, num_channels, kernel_size):
    blocks = []
    cin = input_size
    for cout in num_channels:
        key, k1, k2, k3, k4, k5 = jax.random.split(key, 6)
        blk = {
            "w1": 0.01 * jax.random.normal(k1, (cout, cin, kernel_size), jnp.float32),
            "b1": 0.01 * jax.random.normal(k2, (cout,), jnp.float32),
            "w2": 0.01 * jax.random.normal(k3, (cout, cout, kernel_size), jnp.float32),
            "b2": 0.01 * jax.random.normal(k4, (cout,), jnp.float32),
        }
        if cin != cout:  # 1x1 downsample conv for the residual path
            key, kd = jax.random.split(key)
            blk["wd"] = 0.01 * jax.random.normal(kd, (cout, cin, 1), jnp.float32)
            blk["bd"] = 0.01 * jax.random.normal(k5, (cout,), jnp.float32)
        blocks.append(blk)
        cin = cout
    key, kw, kb = jax.random.split(key, 3)
    lin = {
        "w": 0.01 * jax.random.normal(kw, (output_size, cin), jnp.float32),
        "b": 0.01 * jax.random.normal(kb, (output_size,), jnp.float32),
    }
    return blocks, lin


def _pad_to(arr, shape):
    out = jnp.zeros(shape, arr.dtype)
    return out.at[tuple(slice(0, s) for s in arr.shape)].set(arr)


def prepack_params(blocks, lin, kernel_size):
    """One-time relayout: im2col-flattened, channel/lane-padded weights (zeros)."""
    K = kernel_size
    packed = []
    for blk in blocks:
        cout, cin, _ = blk["w1"].shape
        cin_p, cout_p = _rup8(cin), _rup8(cout)
        p = {
            # W2d[o, k*Cin_p + c] = w[o, c, k]
            "w1": _pad_to(jnp.transpose(blk["w1"], (0, 2, 1)),
                          (cout_p, K, cin_p)).reshape(cout_p, K * cin_p),
            "b1": _pad_to(blk["b1"].reshape(cout, 1), (cout_p, 1)),
            "w2": _pad_to(jnp.transpose(blk["w2"], (0, 2, 1)),
                          (cout_p, K, cout_p)).reshape(cout_p, K * cout_p),
            "b2": _pad_to(blk["b2"].reshape(cout, 1), (cout_p, 1)),
        }
        if "wd" in blk:
            p["wd"] = _pad_to(blk["wd"][:, :, 0], (cout_p, cin_p))
            p["bd"] = _pad_to(blk["bd"].reshape(cout, 1), (cout_p, 1))
        packed.append(p)
    out_size, cf = lin["w"].shape
    o_p = _rup128(out_size)                       # lane-dense head output
    lin_p = {"w": _pad_to(lin["w"].T, (_rup8(cf), o_p)),
             "b": _pad_to(lin["b"].reshape(1, out_size), (1, o_p))}
    return packed, lin_p


def tcn_forward(x, packed_blocks, packed_lin, kernel_size, output_size):
    B, cin, T = x.shape
    cin_p = packed_blocks[0]["w1"].shape[1] // kernel_size
    if cin_p != cin:  # one tiny one-time pad of the raw input (not per layer)
        x = jnp.pad(x, ((0, 0), (0, cin_p - cin), (0, 0)))
    h = x
    for i, p in enumerate(packed_blocks[:-1]):
        h = temporal_block(h, p, 2 ** i, kernel_size)
    last = len(packed_blocks) - 1
    out = temporal_block_with_head(h, packed_blocks[last], packed_lin,
                                   2 ** last, kernel_size)
    return out[:, :output_size]


# ---------------------------------------------------------------------------
# Pure-JAX reference (sanity check)
# ---------------------------------------------------------------------------

def _ref_conv(x, w, b, d):
    K = w.shape[-1]
    pad = (K - 1) * d
    y = jax.lax.conv_general_dilated(
        x, w, window_strides=(1,), padding=[(pad, 0)], rhs_dilation=(d,),
        dimension_numbers=("NCH", "OIH", "NCH"))
    return y + b[None, :, None]


def ref_forward(x, blocks, lin):
    h = x
    for i, blk in enumerate(blocks):
        d = 2 ** i
        h1 = jax.nn.relu(_ref_conv(h, blk["w1"], blk["b1"], d))
        h2 = jax.nn.relu(_ref_conv(h1, blk["w2"], blk["b2"], d))
        res = _ref_conv(h, blk["wd"], blk["bd"], 1) if "wd" in blk else h
        h = jax.nn.relu(h2 + res)
    return h[:, :, -1] @ lin["w"].T + lin["b"]


if __name__ == "__main__":
    # Small shapes consistent with TCN's forward: x is (batch, input_size, seq_len).
    B, input_size, T = 2, 4, 16
    num_channels = [8, 8]
    kernel_size = 3
    output_size = 3

    key = jax.random.PRNGKey(0)
    key, kx = jax.random.split(key)
    x = jax.random.normal(kx, (B, input_size, T), dtype=jnp.float32)

    blocks, lin = init_params(key, input_size, output_size, num_channels, kernel_size)
    packed_blocks, packed_lin = prepack_params(blocks, lin, kernel_size)

    out = tcn_forward(x, packed_blocks, packed_lin, kernel_size, output_size)
    out = jax.block_until_ready(out)

    ref = jax.block_until_ready(ref_forward(x, blocks, lin))
    assert out.shape == (B, output_size)
    assert jnp.allclose(out, ref, atol=1e-5, rtol=1e-5), (out, ref)

    print("KERNEL_OK")
</pallas_src>

<mosaic_0001>
module attributes {stable_mosaic.version = 11 : i64} {
  func.func @_block_kernel(%arg0: i32, %arg1: memref<1x8x16xf32, #tpu.memory_space<vmem>>, %arg2: memref<8x24xf32, #tpu.memory_space<vmem>>, %arg3: memref<8x1xf32, #tpu.memory_space<vmem>>, %arg4: memref<8x24xf32, #tpu.memory_space<vmem>>, %arg5: memref<8x1xf32, #tpu.memory_space<vmem>>, %arg6: memref<8x8xf32, #tpu.memory_space<vmem>>, %arg7: memref<8x1xf32, #tpu.memory_space<vmem>>, %arg8: memref<1x8x16xf32, #tpu.memory_space<vmem>>, %arg9: memref<24x16xf32, #tpu.memory_space<vmem>>, %arg10: memref<24x16xf32, #tpu.memory_space<vmem>>) attributes {dimension_semantics = [#tpu.dimension_semantics<parallel>], iteration_bounds = array<i64: 2>, scalar_prefetch = 0 : i64, scratch_operands = 2 : i64, tpu.core_type = #tpu.core_type<tc>, window_params = [{transform_indices = @transform_0, window_bounds = array<i64: 1, 8, 16>}, {pipeline_mode = #tpu.pipeline_mode<synchronous>, transform_indices = @transform_1, window_bounds = array<i64: 8, 24>}, {pipeline_mode = #tpu.pipeline_mode<synchronous>, transform_indices = @transform_2, window_bounds = array<i64: 8, 1>}, {pipeline_mode = #tpu.pipeline_mode<synchronous>, transform_indices = @transform_3, window_bounds = array<i64: 8, 24>}, {pipeline_mode = #tpu.pipeline_mode<synchronous>, transform_indices = @transform_4, window_bounds = array<i64: 8, 1>}, {pipeline_mode = #tpu.pipeline_mode<synchronous>, transform_indices = @transform_5, window_bounds = array<i64: 8, 8>}, {pipeline_mode = #tpu.pipeline_mode<synchronous>, transform_indices = @transform_6, window_bounds = array<i64: 8, 1>}, {transform_indices = @transform_7, window_bounds = array<i64: 1, 8, 16>}]} {
    %c0 = arith.constant 0 : index
    %c0_0 = arith.constant 0 : index
    %c0_1 = arith.constant 0 : index
    %0 = vector.load %arg1[%c0, %c0_0, %c0_1] : memref<1x8x16xf32, #tpu.memory_space<vmem>>, vector<1x8x16xf32>
    %1 = vector.shape_cast %0 : vector<1x8x16xf32> to vector<8x16xf32>
    %cst = arith.constant 0.000000e+00 : f32
    %2 = vector.broadcast %cst : f32 to vector<8x2xf32>
    %c0_2 = arith.constant 0 : index
    %c0_3 = arith.constant 0 : index
    %3 = vector.load %arg9[%c0_2, %c0_3] : memref<24x16xf32, #tpu.memory_space<vmem>>, vector<8x2xf32>
    tpu.vector_store %arg9[%c0_2, %c0_3], %2 {strides = array<i32>} : memref<24x16xf32, #tpu.memory_space<vmem>>, vector<8x2xf32>,
    %4 = vector.extract_strided_slice %1 {offsets = [0, 0], sizes = [8, 14], strides = [1, 1]} : vector<8x16xf32> to vector<8x14xf32>
    %c0_4 = arith.constant 0 : index
    %c2 = arith.constant 2 : index
    %5 = vector.load %arg9[%c0_4, %c2] : memref<24x16xf32, #tpu.memory_space<vmem>>, vector<8x14xf32>
    tpu.vector_store %arg9[%c0_4, %c2], %4 {strides = array<i32>} : memref<24x16xf32, #tpu.memory_space<vmem>>, vector<8x14xf32>,
    %cst_5 = arith.constant 0.000000e+00 : f32
    %6 = vector.broadcast %cst_5 : f32 to vector<8x1xf32>
    %c8 = arith.constant 8 : index
    %c0_6 = arith.constant 0 : index
    %7 = vector.load %arg9[%c8, %c0_6] : memref<24x16xf32, #tpu.memory_space<vmem>>, vector<8x1xf32>
    tpu.vector_store %arg9[%c8, %c0_6], %6 {strides = array<i32>} : memref<24x16xf32, #tpu.memory_space<vmem>>, vector<8x1xf32>,
    %8 = vector.extract_strided_slice %1 {offsets = [0, 0], sizes = [8, 15], strides = [1, 1]} : vector<8x16xf32> to vector<8x15xf32>
    %c8_7 = arith.constant 8 : index
    %c1 = arith.constant 1 : index
    %9 = vector.load %arg9[%c8_7, %c1] : memref<24x16xf32, #tpu.memory_space<vmem>>, vector<8x15xf32>
    tpu.vector_store %arg9[%c8_7, %c1], %8 {strides = array<i32>} : memref<24x16xf32, #tpu.memory_space<vmem>>, vector<8x15xf32>,
    %c16 = arith.constant 16 : index
    %c0_8 = arith.constant 0 : index
    %10 = vector.load %arg9[%c16, %c0_8] : memref<24x16xf32, #tpu.memory_space<vmem>>, vector<8x16xf32>
    tpu.vector_store %arg9[%c16, %c0_8], %1 {strides = array<i32>} : memref<24x16xf32, #tpu.memory_space<vmem>>, vector<8x16xf32>,
    %c0_9 = arith.constant 0 : index
    %c0_10 = arith.constant 0 : index
    %11 = vector.load %arg2[%c0_9, %c0_10] : memref<8x24xf32, #tpu.memory_space<vmem>>, vector<8x24xf32>
    %c0_11 = arith.constant 0 : index
    %c0_12 = arith.constant 0 : index
    %12 = vector.load %arg9[%c0_11, %c0_12] : memref<24x16xf32, #tpu.memory_space<vmem>>, vector<24x16xf32>
    %cst_13 = arith.constant dense<0.000000e+00> : vector<8x16xf32>
    %13 = tpu.matmul %11, %12, %cst_13 {dimension_numbers = #tpu.dot_dimension_numbers<[1], [0], [0], [1], [0, 0, 1, 1], [], []>} : vector<8x24xf32>, vector<24x16xf32>, vector<8x16xf32> -> vector<8x16xf32>
    %c0_14 = arith.constant 0 : index
    %c0_15 = arith.constant 0 : index
    %14 = vector.load %arg3[%c0_14, %c0_15] : memref<8x1xf32, #tpu.memory_space<vmem>>, vector<8x1xf32>
    %15 = vector.broadcast %14 : vector<8x1xf32> to vector<8x16xf32>
    %16 = arith.addf %13, %15 : vector<8x16xf32>
    %cst_16 = arith.constant 0.000000e+00 : f32
    %17 = vector.broadcast %cst_16 : f32 to vector<8x16xf32>
    %18 = arith.maximumf %16, %17 : vector<8x16xf32>
    %cst_17 = arith.constant 0.000000e+00 : f32
    %19 = vector.broadcast %cst_17 : f32 to vector<8x2xf32>
    %c0_18 = arith.constant 0 : index
    %c0_19 = arith.constant 0 : index
    %20 = vector.load %arg10[%c0_18, %c0_19] : memref<24x16xf32, #tpu.memory_space<vmem>>, vector<8x2xf32>
    tpu.vector_store %arg10[%c0_18, %c0_19], %19 {strides = array<i32>} : memref<24x16xf32, #tpu.memory_space<vmem>>, vector<8x2xf32>,
    %21 = vector.extract_strided_slice %18 {offsets = [0, 0], sizes = [8, 14], strides = [1, 1]} : vector<8x16xf32> to vector<8x14xf32>
    %c0_20 = arith.constant 0 : index
    %c2_21 = arith.constant 2 : index
    %22 = vector.load %arg10[%c0_20, %c2_21] : memref<24x16xf32, #tpu.memory_space<vmem>>, vector<8x14xf32>
    tpu.vector_store %arg10[%c0_20, %c2_21], %21 {strides = array<i32>} : memref<24x16xf32, #tpu.memory_space<vmem>>, vector<8x14xf32>,
    %cst_22 = arith.constant 0.000000e+00 : f32
    %23 = vector.broadcast %cst_22 : f32 to vector<8x1xf32>
    %c8_23 = arith.constant 8 : index
    %c0_24 = arith.constant 0 : index
    %24 = vector.load %arg10[%c8_23, %c0_24] : memref<24x16xf32, #tpu.memory_space<vmem>>, vector<8x1xf32>
    tpu.vector_store %arg10[%c8_23, %c0_24], %23 {strides = array<i32>} : memref<24x16xf32, #tpu.memory_space<vmem>>, vector<8x1xf32>,
    %25 = vector.extract_strided_slice %18 {offsets = [0, 0], sizes = [8, 15], strides = [1, 1]} : vector<8x16xf32> to vector<8x15xf32>
    %c8_25 = arith.constant 8 : index
    %c1_26 = arith.constant 1 : index
    %26 = vector.load %arg10[%c8_25, %c1_26] : memref<24x16xf32, #tpu.memory_space<vmem>>, vector<8x15xf32>
    tpu.vector_store %arg10[%c8_25, %c1_26], %25 {strides = array<i32>} : memref<24x16xf32, #tpu.memory_space<vmem>>, vector<8x15xf32>,
    %c16_27 = arith.constant 16 : index
    %c0_28 = arith.constant 0 : index
    %27 = vector.load %arg10[%c16_27, %c0_28] : memref<24x16xf32, #tpu.memory_space<vmem>>, vector<8x16xf32>
    tpu.vector_store %arg10[%c16_27, %c0_28], %18 {strides = array<i32>} : memref<24x16xf32, #tpu.memory_space<vmem>>, vector<8x16xf32>,
    %c0_29 = arith.constant 0 : index
    %c0_30 = arith.constant 0 : index
    %28 = vector.load %arg4[%c0_29, %c0_30] : memref<8x24xf32, #tpu.memory_space<vmem>>, vector<8x24xf32>
    %c0_31 = arith.constant 0 : index
    %c0_32 = arith.constant 0 : index
    %29 = vector.load %arg10[%c0_31, %c0_32] : memref<24x16xf32, #tpu.memory_space<vmem>>, vector<24x16xf32>
    %cst_33 = arith.constant dense<0.000000e+00> : vector<8x16xf32>
    %30 = tpu.matmul %28, %29, %cst_33 {dimension_numbers = #tpu.dot_dimension_numbers<[1], [0], [0], [1], [0, 0, 1, 1], [], []>} : vector<8x24xf32>, vector<24x16xf32>, vector<8x16xf32> -> vector<8x16xf32>
    %c0_34 = arith.constant 0 : index
    %c0_35 = arith.constant 0 : index
    %31 = vector.load %arg5[%c0_34, %c0_35] : memref<8x1xf32, #tpu.memory_space<vmem>>, vector<8x1xf32>
    %32 = vector.broadcast %31 : vector<8x1xf32> to vector<8x16xf32>
    %33 = arith.addf %30, %32 : vector<8x16xf32>
    %cst_36 = arith.constant 0.000000e+00 : f32
    %34 = vector.broadcast %cst_36 : f32 to vector<8x16xf32>
    %35 = arith.maximumf %33, %34 : vector<8x16xf32>
    %c0_37 = arith.constant 0 : index
    %c0_38 = arith.constant 0 : index
    %36 = vector.load %arg6[%c0_37, %c0_38] : memref<8x8xf32, #tpu.memory_space<vmem>>, vector<8x8xf32>
    %cst_39 = arith.constant dense<0.000000e+00> : vector<8x16xf32>
    %37 = tpu.matmul %36, %1, %cst_39 {dimension_numbers = #tpu.dot_dimension_numbers<[1], [0], [0], [1], [0, 0, 1, 1], [], []>} : vector<8x8xf32>, vector<8x16xf32>, vector<8x16xf32> -> vector<8x16xf32>
    %c0_40 = arith.constant 0 : index
    %c0_41 = arith.constant 0 : index
    %38 = vector.load %arg7[%c0_40, %c0_41] : memref<8x1xf32, #tpu.memory_space<vmem>>, vector<8x1xf32>
    %39 = vector.broadcast %38 : vector<8x1xf32> to vector<8x16xf32>
    %40 = arith.addf %37, %39 : vector<8x16xf32>
    %41 = arith.addf %35, %40 : vector<8x16xf32>
    %cst_42 = arith.constant 0.000000e+00 : f32
    %42 = vector.broadcast %cst_42 : f32 to vector<8x16xf32>
    %43 = arith.maximumf %41, %42 : vector<8x16xf32>
    %c0_43 = arith.constant 0 : index
    %c0_44 = arith.constant 0 : index
    %c0_45 = arith.constant 0 : index
    %44 = vector.load %arg8[%c0_43, %c0_44, %c0_45] : memref<1x8x16xf32, #tpu.memory_space<vmem>>, vector<1x8x16xf32>
    %45 = vector.shape_cast %44 : vector<1x8x16xf32> to vector<8x16xf32>
    %46 = vector.shape_cast %43 : vector<8x16xf32> to vector<1x8x16xf32>
    tpu.vector_store %arg8[%c0_43, %c0_44, %c0_45], %46 {strides = array<i32>} : memref<1x8x16xf32, #tpu.memory_space<vmem>>, vector<1x8x16xf32>,
    return
  }
  func.func @transform_0(%arg0: i32) -> (i32, i32, i32) {
    %c0_i32 = arith.constant 0 : i32
    %c0_i32_0 = arith.constant 0 : i32
    %c0_i32_1 = arith.constant 0 : i32
    return %arg0, %c0_i32, %c0_i32_0 : i32, i32, i32
  }
  func.func @transform_1(%arg0: i32) -> (i32, i32) {
    %c0_i32 = arith.constant 0 : i32
    %c0_i32_0 = arith.constant 0 : i32
    %c0_i32_1 = arith.constant 0 : i32
    return %c0_i32, %c0_i32_0 : i32, i32
  }
  func.func @transform_2(%arg0: i32) -> (i32, i32) {
    %c0_i32 = arith.constant 0 : i32
    %c0_i32_0 = arith.constant 0 : i32
    %c0_i32_1 = arith.constant 0 : i32
    return %c0_i32, %c0_i32_0 : i32, i32
  }
  func.func @transform_3(%arg0: i32) -> (i32, i32) {
    %c0_i32 = arith.constant 0 : i32
    %c0_i32_0 = arith.constant 0 : i32
    %c0_i32_1 = arith.constant 0 : i32
    return %c0_i32, %c0_i32_0 : i32, i32
  }
  func.func @transform_4(%arg0: i32) -> (i32, i32) {
    %c0_i32 = arith.constant 0 : i32
    %c0_i32_0 = arith.constant 0 : i32
    %c0_i32_1 = arith.constant 0 : i32
    return %c0_i32, %c0_i32_0 : i32, i32
  }
  func.func @transform_5(%arg0: i32) -> (i32, i32) {
    %c0_i32 = arith.constant 0 : i32
    %c0_i32_0 = arith.constant 0 : i32
    %c0_i32_1 = arith.constant 0 : i32
    return %c0_i32, %c0_i32_0 : i32, i32
  }
  func.func @transform_6(%arg0: i32) -> (i32, i32) {
    %c0_i32 = arith.constant 0 : i32
    %c0_i32_0 = arith.constant 0 : i32
    %c0_i32_1 = arith.constant 0 : i32
    return %c0_i32, %c0_i32_0 : i32, i32
  }
  func.func @transform_7(%arg0: i32) -> (i32, i32, i32) {
    %c0_i32 = arith.constant 0 : i32
    %c0_i32_0 = arith.constant 0 : i32
    %c0_i32_1 = arith.constant 0 : i32
    return %arg0, %c0_i32, %c0_i32_0 : i32, i32, i32
  }
}

</mosaic_0001>

<bundles_post_ra>
// kernel: tpu_custom_call.1
= control target key start
LH: loop header
LB: loop body
LE: loop exit
PB: predicated region body
PF: predicated region fallthrough
CT: control target
= control target key end

     0   :  { %12 = vsyncpa [#allocation5], 0  ;;  %s984_s0 = inlined_call_operand.vmem [shape: f32[2,8,16], index: 0, kind: input, shape index: {}]   ;;  %s985_s1 = inlined_call_operand.vmem [shape: f32[8,24], index: 1, kind: input, shape index: {}]   ;;  %s986_s2 = inlined_call_operand.vmem [shape: f32[8,1], index: 2, kind: input, shape index: {}]   ;;  %s987_s3 = inlined_call_operand.vmem [shape: f32[8,24], index: 3, kind: input, shape index: {}]   ;;  %s988_s4 = inlined_call_operand.vmem [shape: f32[8,1], index: 4, kind: input, shape index: {}]   ;;  %s989_s5 = inlined_call_operand.vmem [shape: f32[8,8], index: 5, kind: input, shape index: {}]   ;;  %s990_s6 = inlined_call_operand.vmem [shape: f32[8,1], index: 6, kind: input, shape index: {}]   ;;  %s991_s7 = inlined_call_operand.hbm [shape: f32[2,8,16], index: 7, kind: output, shape index: {}]  }
   0x1   :  { %14 = vsyncpa [#allocation5 + $0x1], 0  ;;  %s840_s24 = smov 0   ;;  %s842_s25 = smov 0  }
   0x2   :  { %s844_s26 = smov 0   ;;  %s846_s27 = smov 0  }
   0x3 LB: > { %s861_s28 = sadd.s32 4294967295, %s791_s27   ;;  %s630_s29 = sadd.s32 4294967294, %s791_s27   ;;  %s791_s27 = sphi %s846_s27, %s997_s27   ;;  %s787_s26 = sphi %s844_s26, %s996_s26   ;;  %s783_s25 = sphi %s842_s25, %s995_s25   ;;  %s779_s24 = sphi %s840_s24, %s994_s24  }
   0x4   : > { %s865_s30 = sadd.s32 1, %s791_s27   ;;  %s179_s8 = sadd.s32 1, %s787_s26 }
   0x5   : > { %s176_s9 = ssub.s32 %s791_s27, %s865_s30  ;;  %p189_p0 = scmp.ne.s32.totalorder %s787_s26, %s783_s25 }
   0x6   : > { %p177_p1 = scmp.eq.s32.totalorder %s176_s9, 0  ;;  %p190_p2 = scmp.eq.s32.totalorder %s861_s28, 1 }
   0x7   : > { %p195_p3 = scmp.ne.s32.totalorder %s783_s25, %s779_s24  ;;  %p196_p4 = scmp.eq.s32.totalorder %s630_s29, 1 }
   0x8   : > { %s876_s10 = scalar_select %p177_p1, %s787_s26, %s179_s8  }
   0x9   : > { %p878_p5 = por %p190_p2, %p189_p0  ;;  %p882_p6 = por %p196_p4, %p195_p3 }
   0xa   : > { %p633_p7 = scmp.ge.s32.totalorder %s791_s27, 1  ;;  %p239_p8 = scmp.lt.s32.totalorder %s791_s27, 3 }
   0xc   : > { %p240_p9 = pnand %p633_p7, %p239_p8 }
   0xd   : > { %p270_p10 = scmp.lt.s32.totalorder (!%p240_p9), %s861_s28, 1  ;;  %vm275_vm0 = vcmask (!%p240_p9), 15360   ;;  %v793_v0 = vmov (!%p240_p9), 0.0   ;;  %vm283_vm1 = vcmask (!%p240_p9), 7168   ;;  %v794_v1 = vmov (!%p240_p9), 0.0|0.0   ;;  %s795_s18 = smov (!%p240_p9), 2  }
   0xe   : > { %243 = sbr.rel (%p240_p9) target bundleno = 741 (0x2e5), region = 48  ;;  %276 = vst.msk [vmem:[#allocation2] sm:$0xff] (!%p240_p9), %vm275_vm0, %v793_v0  ;;  %377 = vst.msk [vmem:[#allocation3] sm:$0xff] (!%p240_p9), %vm275_vm0, %v793_v0  ;;  %676 = vmatprep.subr.bf16.mxu0 (!%p240_p9), %v794_v1  ;;  %679 = vmatprep.subr.bf16.mxu1 (!%p240_p9), %v794_v1  ;;  %vm290_vm2 = vcmask (!%p240_p9), 130048   ;;  %s796_s19 = smov (!%p240_p9), 1   ;;  %vm797_vm3 = vmmov (!%p240_p9), 0  }
   0xf   : > { %284 = vst.msk [vmem:[#allocation2 + $0x8] sm:$0xff] (!%p240_p9), %vm283_vm1, %v793_v0  ;;  %383 = vst.msk [vmem:[#allocation3 + $0x8] sm:$0xff] (!%p240_p9), %vm283_vm1, %v793_v0  ;;  %659 = vmatprep.mubr.msk.f32.mxu0 (!%p240_p9), %vm797_vm3, %v793_v0  ;;  %668 = vmatprep.mubr.msk.f32.mxu1 (!%p240_p9), %vm797_vm3, %v793_v0  ;;  %v296_v3 = vld [vmem:[%s986_s2] sm:$0xff] (!%p240_p9)  ;;  %v798_v4 = vmov (!%p240_p9), 0   ;;  %vm281_vm4 = vcmask (!%p240_p9), 130064   ;;  %vm288_vm5 = vcmask (!%p240_p9), 130056  }
  0x10   : > { %727 = vset.pattern.permute.xlu1 (!%p240_p9), %v798_v4  ;;  %728 = vset.pattern.permute.xlu0 (!%p240_p9), %v798_v4  ;;  %v292_v11 = vld [vmem:[%s985_s1] sm:$0xff] (!%p240_p9)  ;;  %vm302_vm6 = vcmask (!%p240_p9), 195584   ;;  %vm480_vm7 = vcmask (!%p240_p9), 64512   ;;  %s640_s20 = sshll.u32 (!%p240_p9), %s861_s28, 7 }
  0x11   : > { %299 = vperm.xlu1 (!%p240_p9), %727, %v296_v3   ;;  %v393_v17 = vld [vmem:[%s988_s4] sm:$0xff] (!%p240_p9)  ;;  %s941_s8 = scalar_lea.hbm (!%p240_p9), %s991_s7, %s640_s20 }
  0x12   : > { %v473_v18 = vld [vmem:[%s989_s5] sm:$0xff] (!%p240_p9) }
  0x13   : > { %v474_v19 = vld [vmem:[%s990_s6] sm:$0xff] (!%p240_p9) }
  0x14   : > { %v389_v25 = vld [vmem:[%s987_s3] sm:$0xff] (!%p240_p9) }
  0x15   : > { %s271_s13 = scalar_select %p270_p10, %s861_s28, 1 }
  0x16   : > { %s799_s28 = smov [#allocation4]  }
  0x17   : > { %s635_s14 = sshll.u32 %s271_s13, 3 }
  0x18   : > { %s273_s17 = scalar_lea.vmem %s984_s0, %s635_s14  ;;  %s733_s14 = sshll.u32 %s799_s28, 4  ;;  %s734_s14 = int_to_ptr.vmem [resolvable:$false] %s733_s14 }
  0x19   : > { %v274_v2 = vld [vmem:[%s273_s17] sm:$0xff]  ;;  %s735_s15 = scalar_lea.vmem %s734_s14, 256 }
  0x1a   : > { %278 = vrot.lane.b32.xlu0 %v274_v2, %s795_s18  ;;  %291 = vst.msk [vmem:[#allocation2 + $0x10] sm:$0xff] %vm290_vm2, %v274_v2 }
  0x1e   : > { %285 = vrot.lane.b32.xlu0 %v274_v2, %s796_s19 }
  0x21   : > { %v295_v10 = vld [vmem:[#allocation2 + $0x10] sm:$0xff] }
  0x8c   : > { %v279_v5 = vpop.permute.xlu0 %278 }
  0x8d   : > { %282 = vst.msk [vmem:[#allocation2] sm:$0xff] %vm281_vm4, %v279_v5 }
  0x90   : > { %v286_v6 = vpop.permute.xlu0 %285  ;;  %v300_v12 = vpop.permute.xlu1 %299 }
  0x91   : > { %289 = vst.msk [vmem:[#allocation2 + $0x8] sm:$0xff] %vm288_vm5, %v286_v6 }
  0x94   : > { %v293_v7 = vld [vmem:[#allocation2] sm:$0xff] }
  0x98   : > { %v294_v8 = vld [vmem:[#allocation2 + $0x8] sm:$0xff] }
  0x99   : > { %v677_v9 = vpack.c.bf16 %v294_v8, %v293_v7 }
  0x9b   : > { %678 = vmatpush3.bf16.msra.mxu0 %v677_v9 }
  0x9c   : > { %657 = vmatprep.subr.mxu0 %v793_v0 }
  0x9f   : > { %658 = vmatpush3.msra.mxu0 %v295_v10 }
  0xa0   : > { %660 = vmatmul.mubr.msk.f32.vlgmr.msra.gmra.mrb[0].mxu0 %vm302_vm6, %v292_v11  ;;  %671 = vmatprep.subr.mxu0 %v793_v0 }
  0xa1   : > { %672 = vmatpush3.msra.mxu0 %v274_v2  ;;  %673 = vmatprep.mubr.msk.f32.mxu0 %vm797_vm3, %v793_v0 }
  0xa4   : > { %674 = vmatmul.mubr.msk.f32.vlgmr.msra.gmra.mrb[2].mxu0 %vm480_vm7, %v473_v18 }
 0x173   : > { %v372_v13 = vpop.f32.mrb[0].mxu0 }
 0x174   : > { %v373_v14 = vadd.f32 %v372_v13, %v300_v12  ;;  %v661_v15 = vpop.f32.mrb[1].mxu0 }
 0x176   : > { %v376_v16 = vmax.f32 %v373_v14, 0.0 }
 0x177   : > { %v550_v27 = vpop.f32.mrb[2].mxu0 }
 0x178   : > { %388 = vst.msk [vmem:[#allocation3 + $0x10] sm:$0xff] %vm290_vm2, %v376_v16  ;;  %384 = vrot.lane.b32.xlu0 %v376_v16, %s796_s19  ;;  %379 = vrot.lane.b32.xlu1 %v376_v16, %s795_s18  ;;  %v675_v28 = vpop.f32.mrb[3].mxu0  ;;  %s267_s18 = sand.u32 1, %s783_s25  }
 0x179   : > { %s634_s19 = sshll.u32 %s267_s18, 3  ;;  %s558_s9 = scalar_lea.sflag [#allocation5], %s267_s18 }
 0x17a   : > { %s269_s21 = scalar_lea.vmem [#allocation4], %s634_s19 }
 0x17b   : > { %s571_s22 = sshll.u32 %s269_s21, 4  ;;  %s943_s22 = int_to_ptr.vmem [resolvable:$true] %s571_s22 }
 0x17c   : > { %396 = vperm.xlu1 %727, %v393_v17   ;;  %477 = vperm.xlu0 %728, %v474_v19   ;;  %s729_s13 = scalar_lea.vmem %s943_s22, 128  ;;  %p736_p0 = scmp.lt.s32.totalorder %s943_s22, %s734_s14 }
 0x17d   : > { %p730_p11 = scmp.ne.s32.totalorder %s943_s22, %s729_s13  ;;  %p737_p1 = scmp.lt.s32.totalorder %s735_s15, %s729_s13 }
 0x17f   : > { %v392_v26 = vld [vmem:[#allocation3 + $0x10] sm:$0xff]  ;;  %p731_p12 = pnand %p730_p11, %p878_p5  ;;  %p738_p2 = por %p737_p1, %p736_p0 }
 0x181   : > { %p732_p13 = pneg %p731_p12 }
 0x183   : > { %p739_p3 = pnand %p738_p2, %p732_p13 }
 0x1ea   : > { %v385_v20 = vpop.permute.xlu0 %384  ;;  %v380_v21 = vpop.permute.xlu1 %379 }
 0x1eb   : > { %387 = vst.msk [vmem:[#allocation3 + $0x8] sm:$0xff] %vm288_vm5, %v385_v20 }
 0x1ec   : > { %382 = vst.msk [vmem:[#allocation3] sm:$0xff] %vm281_vm4, %v380_v21 }
 0x1f2   : > { %v391_v23 = vld [vmem:[#allocation3 + $0x8] sm:$0xff] }
 0x1f3   : > { %v390_v22 = vld [vmem:[#allocation3] sm:$0xff] }
 0x1f4   : > { %v680_v24 = vpack.c.bf16 %v391_v23, %v390_v22 }
 0x1f6   : > { %681 = vmatpush3.bf16.msra.mxu1 %v680_v24 }
 0x1f7   : > { %666 = vmatprep.subr.mxu1 %v793_v0 }
 0x1fa   : > { %667 = vmatpush3.msra.mxu1 %v392_v26 }
 0x1fb   : > { %669 = vmatmul.mubr.msk.f32.vlgmr.msra.gmra.mrb[0].mxu1 %vm302_vm6, %v389_v25  ;;  %v478_v29 = vpop.permute.xlu0 %477  ;;  %v397_v30 = vpop.permute.xlu1 %396 }
 0x1fc   : > { %v551_v34 = vadd.f32 %v550_v27, %v478_v29 }
 0x2ce   : > { %v468_v31 = vpop.f32.mrb[0].mxu1 }
 0x2cf   : > { %v469_v32 = vadd.f32 %v468_v31, %v397_v30  ;;  %v670_v33 = vpop.f32.mrb[1].mxu1 }
 0x2d1   : > { %v472_v35 = vmax.f32 %v469_v32, 0.0 }
 0x2d3   : > { %v554_v36 = vadd.f32 %v551_v34, %v472_v35 }
 0x2d5   : > { %v555_v37 = vmax.f32 %v554_v36, 0.0 }
 0x2d7   : > { %556 = vst.msk [vmem:[%s269_s21] sm:$0xff] %vm290_vm2, %v555_v37 }
 0x2d8   : > { %742 = shalt.err (!%p739_p3)
}
 0x2d9   : > { %s743_s16 = scalar_lea.hbm %s941_s8, 128  ;;  %s747_s19 = scalar_lea.hbm %s991_s7, 256 }
 0x2da   : > { %p744_p4 = scmp.ne.s32.totalorder %s941_s8, %s743_s16  ;;  %p748_p9 = scmp.lt.u32.totalorder %s941_s8, %s991_s7 }
 0x2db   : > { %p749_p10 = scmp.lt.u32.totalorder %s747_s19, %s743_s16  ;;  %p751_p12 = scmp.lt.u32.totalorder %s743_s16, %s941_s8 }
 0x2dc   : > { %p745_p7 = pnand %p744_p4, %p878_p5 }
 0x2dd   : > { %p750_p11 = por %p749_p10, %p748_p9 }
 0x2de   : > { %p746_p8 = pneg %p745_p7 }
 0x2df   : > { %p752_p13 = por %p751_p12, %p750_p11 }
 0x2e1   : > { %p753_p0 = pnand %p752_p13, %p746_p8 }
 0x2e3   : > { %756 = shalt.err (!%p753_p0)
}
 0x2e4   : > { %682 = dma.vmem_to_hbm [thread:$0]  (%p878_p5), %s943_s22, 128, %s941_s8, %s558_s9  }
 0x2e5 PF: > { %p688_p1 = scmp.ge.s32.totalorder %s791_s27, 2  ;;  %s583_s23 = sand.u32 1, %s779_s24  }
 0x2e6   : > { %s584_s29 = scalar_lea.sflag [#allocation5], %s583_s23 }
 0x2e7   : > { %p685_p2 = pnand %p688_p1, %p882_p6 }
 0x2e9   : > { %774 = dma.done.wait (!%p685_p2), %s584_s29, 128  }
 0x2ea   : > { %776 = vsyncadd (!%p685_p2), %s584_s29, 4294967168  ;;  %p17_p3 = scmp.ge.s32.totalorder %s865_s30, 4   ;;  %s994_s24 = smov %s783_s25 }
 0x2eb   : > { %s995_s25 = smov %s787_s26  ;;  %s996_s26 = smov %s876_s10 }
 0x2ec   : > { %s997_s27 = smov %s865_s30  ;;  %19 = sbr.rel (!%p17_p3) target bundleno = 3 (0x3), region = 83 }
 0x2f3   :  { %589 = vsyncpa [#allocation5], 1 }
 0x2f4   :  { %591 = vsyncpa [#allocation5 + $0x1], 1 }

</bundles_post_ra>
